<compile_context>
chip_gen: v5e
topology: v5e:2x2
jax: 0.10.0
libtpu: 0.0.40
codegen_flags: <defaults>
</compile_context>

<pallas_src>
import math
import functools

import jax
import jax.numpy as jnp
from jax.experimental import pallas as pl
from jax.experimental.pallas import tpu as pltpu

EPS = 0.003
_LANE = 128


def _round_up(x, m):
    return (x + m - 1) // m * m


def _cdiv(a, b):
    return -(-a // b)


def _actor_kernel(action_lim, action_dim,
                  x_ref,
                  w1_ref, b1_ref,
                  w2_ref, b2_ref,
                  w3_ref, b3_ref,
                  w4_ref, b4_ref,
                  o_ref):
    """One batch-tile of the fused 4-layer MLP. All refs are VMEM tiles.

    x is f32 and cast to the weight storage dtype (bf16) in-VMEM; all dots
    accumulate in f32 on the MXU; biases/activations after the adds are f32.
    The padded fc4 columns are sliced off before tanh/store so the output
    block is lane-narrow ([tb, action_dim]) but tiny in bytes.
    """
    cd = w1_ref.dtype  # compute (storage) dtype, e.g. bfloat16

    x = x_ref[...].astype(cd)                                   # (tb, state_dim)
    h = jnp.dot(x, w1_ref[...], preferred_element_type=jnp.float32) + b1_ref[...]
    h = jnp.maximum(h, 0.0)

    h = jnp.dot(h.astype(cd), w2_ref[...],
                preferred_element_type=jnp.float32) + b2_ref[...]
    h = jnp.maximum(h, 0.0)

    h = jnp.dot(h.astype(cd), w3_ref[...],
                preferred_element_type=jnp.float32) + b3_ref[...]
    h = jnp.maximum(h, 0.0)  # padded cols are relu(0 + 0) == 0 exactly

    a = jnp.dot(h.astype(cd), w4_ref[...],
                preferred_element_type=jnp.float32) + b4_ref[...]
    a = a[:, :action_dim]                                        # drop pad cols
    o_ref[...] = (jnp.tanh(a) * action_lim).astype(o_ref.dtype)


@functools.partial(jax.jit,
                   static_argnames=("action_dim", "action_lim", "block_batch"))
def actor_forward(state, params, *, action_dim, action_lim, block_batch=1024):
    """Fused Actor forward.

    state:  [n, state_dim] float32
    params: dict from init_actor_params (bf16 weights / f32 biases)
    returns [n, action_dim] float32
    """
    n, sd = state.shape
    n_out_pad = params["w4"].shape[1]   # padded action dim (multiple of 128)

    # ---- batch tiling -------------------------------------------------------
    # Tiles are multiples of 16 (bf16 sublane packing).  Use at least 2 grid
    # steps whenever the batch allows so ("parallel",) shards across both
    # TensorCores on v7x; tiles are balanced so tail padding stays small.
    n_al = _round_up(max(n, 1), 16)
    num_tiles = max(2, _cdiv(n_al, _round_up(block_batch, 16)))
    tb = min(n_al, _round_up(_cdiv(n_al, num_tiles), 16))
    n_pad = _round_up(max(n, 1), tb)
    grid = (n_pad // tb,)

    # Only pad the batch tail when needed; no feature-dim pad, no dtype cast
    # (the bf16 cast happens inside the kernel on VMEM-resident tiles).
    x = state if n_pad == n else jnp.pad(state, ((0, n_pad - n), (0, 0)))

    flops = 2 * n_pad * (sd * 256 + 256 * 128 + 128 * 128 + 128 * n_out_pad)
    weight_bytes = sum(int(v.size) * v.dtype.itemsize for v in params.values())
    bytes_accessed = (n_pad * sd * 4          # f32 input
                      + weight_bytes
                      + n_pad * action_dim * 4)   # narrow f32 output
    cost = pl.CostEstimate(flops=flops,
                           transcendentals=n_pad * action_dim,
                           bytes_accessed=bytes_accessed)

    kernel = functools.partial(_actor_kernel, float(action_lim), int(action_dim))

    def resident(shape):
        # Full-array block with a constant index_map -> stays VMEM-resident,
        # never re-DMA'd across grid steps.
        return pl.BlockSpec(shape, lambda i: (0, 0))

    out_padded = pl.pallas_call(
        kernel,
        out_shape=jax.ShapeDtypeStruct((n_pad, action_dim), jnp.float32),
        grid=grid,
        in_specs=[
            pl.BlockSpec((tb, sd), lambda i: (i, 0)),   # x: tiled on batch only
            resident(params["w1"].shape), resident(params["b1"].shape),
            resident(params["w2"].shape), resident(params["b2"].shape),
            resident(params["w3"].shape), resident(params["b3"].shape),
            resident(params["w4"].shape), resident(params["b4"].shape),
        ],
        out_specs=pl.BlockSpec((tb, action_dim), lambda i: (i, 0)),
        compiler_params=pltpu.CompilerParams(
            dimension_semantics=("parallel",),      # megacore on v7x
            vmem_limit_bytes=32 * 1024 * 1024),     # safe on v5e/v6e/v7x
        cost_estimate=cost,
    )(x,
      params["w1"], params["b1"],
      params["w2"], params["b2"],
      params["w3"], params["b3"],
      params["w4"], params["b4"])

    return out_padded if n_pad == n else out_padded[:n]


def init_actor_params(key, state_dim, action_dim, compute_dtype=jnp.bfloat16):
    """Init mirroring PyTorch nn.Linear defaults, then cast/pad for the kernel.

    nn.Linear(in, out): weight & bias ~ U(-1/sqrt(in), 1/sqrt(in)); fc4 weight
    is overwritten with U(-EPS, EPS) (bias keeps default init). Weights are
    stored transposed ([in, out]); only the layers that need lane-dense shapes
    are zero-padded:
      w1: [state_dim, 256]                 b1: [1, 256]
      w2: [256, 128]                       b2: [1, 128]
      w3: [128, 128]  (cols 64..127 = 0)   b3: [1, 128] (cols 64..127 = 0)
      w4: [128, round_up(action_dim,128)]  b4: [1, round_up(action_dim,128)]
    Padding is exact zeros, so results on the real columns are unchanged.
    Returns (kernel params [bf16 weights / f32 biases], raw unpadded f32 params).
    """
    dims = [(state_dim, 256), (256, 128), (128, 64), (64, action_dim)]
    keys = jax.random.split(key, 8)
    raw = {}
    for i, (fan_in, fan_out) in enumerate(dims, start=1):
        bound = 1.0 / math.sqrt(fan_in)
        raw[f"w{i}"] = jax.random.uniform(
            keys[2 * (i - 1)], (fan_in, fan_out),
            minval=-bound, maxval=bound, dtype=jnp.float32)
        raw[f"b{i}"] = jax.random.uniform(
            keys[2 * (i - 1) + 1], (1, fan_out),
            minval=-bound, maxval=bound, dtype=jnp.float32)
    # fc4 weight re-initialized to U(-EPS, EPS), as in the PyTorch module.
    raw["w4"] = jax.random.uniform(
        jax.random.fold_in(key, 1234), (64, action_dim),
        minval=-EPS, maxval=EPS, dtype=jnp.float32)

    n_out_pad = _round_up(action_dim, _LANE)

    def pad2(a, rows, cols):
        return jnp.pad(a, ((0, rows - a.shape[0]), (0, cols - a.shape[1])))

    params = {
        "w1": raw["w1"].astype(compute_dtype),                    # [sd, 256]
        "b1": raw["b1"],
        "w2": raw["w2"].astype(compute_dtype),                    # [256, 128]
        "b2": raw["b2"],
        "w3": pad2(raw["w3"], 128, 128).astype(compute_dtype),
        "b3": pad2(raw["b3"], 1, 128),
        "w4": pad2(raw["w4"], 128, n_out_pad).astype(compute_dtype),
        "b4": pad2(raw["b4"], 1, n_out_pad),
    }
    return params, raw


if __name__ == "__main__":
    # Small but non-trivial shapes: exercises the >=2-step batch grid (megacore
    # split), uneven-batch tail padding, and the narrow-output store path.
    n = 200
    state_dim = 32
    action_dim = 4
    action_lim = 2.0

    key = jax.random.PRNGKey(0)
    k_params, k_state = jax.random.split(key)

    params, raw = init_actor_params(k_params, state_dim, action_dim)
    state = jax.random.normal(k_state, (n, state_dim), dtype=jnp.float32)

    action = actor_forward(state, params,
                           action_dim=action_dim,
                           action_lim=action_lim)
    action = jax.block_until_ready(action)

    # Reference 1: same math/dtypes as the kernel (bf16 weights, f32 accum).
    def matched_ref(x, p):
        cd = p["w1"].dtype
        h = jnp.maximum(jnp.dot(x.astype(cd), p["w1"],
                                preferred_element_type=jnp.float32) + p["b1"], 0.0)
        h = jnp.maximum(jnp.dot(h.astype(cd), p["w2"],
                                preferred_element_type=jnp.float32) + p["b2"], 0.0)
        h = jnp.maximum(jnp.dot(h.astype(cd), p["w3"],
                                preferred_element_type=jnp.float32) + p["b3"], 0.0)
        a = jnp.dot(h.astype(cd), p["w4"],
                    preferred_element_type=jnp.float32) + p["b4"]
        return (jnp.tanh(a) * action_lim)[:, :action_dim]

    # Reference 2: the original full-f32, unpadded math (PyTorch semantics).
    def f32_ref(x, p):
        h = jnp.maximum(x @ p["w1"] + p["b1"], 0.0)
        h = jnp.maximum(h @ p["w2"] + p["b2"], 0.0)
        h = jnp.maximum(h @ p["w3"] + p["b3"], 0.0)
        return jnp.tanh(h @ p["w4"] + p["b4"]) * action_lim

    ref_matched = matched_ref(state, params)
    ref_f32 = f32_ref(state, raw)

    assert action.shape == (n, action_dim)
    assert bool(jnp.all(jnp.abs(action) <= action_lim + 1e-5))
    assert bool(jnp.allclose(action, ref_matched, atol=2e-3, rtol=0.0)), \
        float(jnp.max(jnp.abs(action - ref_matched)))
    # bf16 weight storage vs. pure-f32 module: loose tolerance.
    assert bool(jnp.allclose(action, ref_f32, atol=5e-2, rtol=0.0)), \
        float(jnp.max(jnp.abs(action - ref_f32)))

    print("KERNEL_OK")
</pallas_src>

<mosaic_0001>
module attributes {stable_mosaic.version = 11 : i64} {
  func.func @_actor_kernel(%arg0: i32, %arg1: memref<112x32xf32, #tpu.memory_space<vmem>>, %arg2: memref<32x256xbf16, #tpu.memory_space<vmem>>, %arg3: memref<1x256xf32, #tpu.memory_space<vmem>>, %arg4: memref<256x128xbf16, #tpu.memory_space<vmem>>, %arg5: memref<1x128xf32, #tpu.memory_space<vmem>>, %arg6: memref<128x128xbf16, #tpu.memory_space<vmem>>, %arg7: memref<1x128xf32, #tpu.memory_space<vmem>>, %arg8: memref<128x128xbf16, #tpu.memory_space<vmem>>, %arg9: memref<1x128xf32, #tpu.memory_space<vmem>>, %arg10: memref<112x4xf32, #tpu.memory_space<vmem>>) attributes {dimension_semantics = [#tpu.dimension_semantics<parallel>], iteration_bounds = array<i64: 2>, scalar_prefetch = 0 : i64, scratch_operands = 0 : i64, tpu.core_type = #tpu.core_type<tc>, window_params = [{transform_indices = @transform_0, window_bounds = array<i64: 112, 32>}, {pipeline_mode = #tpu.pipeline_mode<synchronous>, transform_indices = @transform_1, window_bounds = array<i64: 32, 256>}, {pipeline_mode = #tpu.pipeline_mode<synchronous>, transform_indices = @transform_2, window_bounds = array<i64: 1, 256>}, {pipeline_mode = #tpu.pipeline_mode<synchronous>, transform_indices = @transform_3, window_bounds = array<i64: 256, 128>}, {pipeline_mode = #tpu.pipeline_mode<synchronous>, transform_indices = @transform_4, window_bounds = array<i64: 1, 128>}, {pipeline_mode = #tpu.pipeline_mode<synchronous>, transform_indices = @transform_5, window_bounds = array<i64: 128, 128>}, {pipeline_mode = #tpu.pipeline_mode<synchronous>, transform_indices = @transform_6, window_bounds = array<i64: 1, 128>}, {pipeline_mode = #tpu.pipeline_mode<synchronous>, transform_indices = @transform_7, window_bounds = array<i64: 128, 128>}, {pipeline_mode = #tpu.pipeline_mode<synchronous>, transform_indices = @transform_8, window_bounds = array<i64: 1, 128>}, {transform_indices = @transform_9, window_bounds = array<i64: 112, 4>}]} {
    %c0 = arith.constant 0 : index
    %c0_0 = arith.constant 0 : index
    %0 = vector.load %arg1[%c0, %c0_0] : memref<112x32xf32, #tpu.memory_space<vmem>>, vector<112x32xf32>
    %1 = arith.truncf %0 : vector<112x32xf32> to vector<112x32xbf16>
    %c0_1 = arith.constant 0 : index
    %c0_2 = arith.constant 0 : index
    %2 = vector.load %arg2[%c0_1, %c0_2] : memref<32x256xbf16, #tpu.memory_space<vmem>>, vector<32x256xbf16>
    %cst = arith.constant dense<0.000000e+00> : vector<112x256xf32>
    %3 = tpu.matmul %1, %2, %cst {dimension_numbers = #tpu.dot_dimension_numbers<[1], [0], [0], [1], [0, 0, 1, 1], [], []>} : vector<112x32xbf16>, vector<32x256xbf16>, vector<112x256xf32> -> vector<112x256xf32>
    %c0_3 = arith.constant 0 : index
    %c0_4 = arith.constant 0 : index
    %4 = vector.load %arg3[%c0_3, %c0_4] : memref<1x256xf32, #tpu.memory_space<vmem>>, vector<1x256xf32>
    %5 = vector.broadcast %4 : vector<1x256xf32> to vector<112x256xf32>
    %6 = arith.addf %3, %5 : vector<112x256xf32>
    %cst_5 = arith.constant 0.000000e+00 : f32
    %7 = vector.broadcast %cst_5 : f32 to vector<112x256xf32>
    %8 = arith.maximumf %6, %7 : vector<112x256xf32>
    %9 = arith.truncf %8 : vector<112x256xf32> to vector<112x256xbf16>
    %c0_6 = arith.constant 0 : index
    %c0_7 = arith.constant 0 : index
    %10 = vector.load %arg4[%c0_6, %c0_7] : memref<256x128xbf16, #tpu.memory_space<vmem>>, vector<256x128xbf16>
    %cst_8 = arith.constant dense<0.000000e+00> : vector<112x128xf32>
    %11 = tpu.matmul %9, %10, %cst_8 {dimension_numbers = #tpu.dot_dimension_numbers<[1], [0], [0], [1], [0, 0, 1, 1], [], []>} : vector<112x256xbf16>, vector<256x128xbf16>, vector<112x128xf32> -> vector<112x128xf32>
    %c0_9 = arith.constant 0 : index
    %c0_10 = arith.constant 0 : index
    %12 = vector.load %arg5[%c0_9, %c0_10] : memref<1x128xf32, #tpu.memory_space<vmem>>, vector<1x128xf32>
    %13 = vector.broadcast %12 : vector<1x128xf32> to vector<112x128xf32>
    %14 = arith.addf %11, %13 : vector<112x128xf32>
    %cst_11 = arith.constant 0.000000e+00 : f32
    %15 = vector.broadcast %cst_11 : f32 to vector<112x128xf32>
    %16 = arith.maximumf %14, %15 : vector<112x128xf32>
    %17 = arith.truncf %16 : vector<112x128xf32> to vector<112x128xbf16>
    %c0_12 = arith.constant 0 : index
    %c0_13 = arith.constant 0 : index
    %18 = vector.load %arg6[%c0_12, %c0_13] : memref<128x128xbf16, #tpu.memory_space<vmem>>, vector<128x128xbf16>
    %cst_14 = arith.constant dense<0.000000e+00> : vector<112x128xf32>
    %19 = tpu.matmul %17, %18, %cst_14 {dimension_numbers = #tpu.dot_dimension_numbers<[1], [0], [0], [1], [0, 0, 1, 1], [], []>} : vector<112x128xbf16>, vector<128x128xbf16>, vector<112x128xf32> -> vector<112x128xf32>
    %c0_15 = arith.constant 0 : index
    %c0_16 = arith.constant 0 : index
    %20 = vector.load %arg7[%c0_15, %c0_16] : memref<1x128xf32, #tpu.memory_space<vmem>>, vector<1x128xf32>
    %21 = vector.broadcast %20 : vector<1x128xf32> to vector<112x128xf32>
    %22 = arith.addf %19, %21 : vector<112x128xf32>
    %cst_17 = arith.constant 0.000000e+00 : f32
    %23 = vector.broadcast %cst_17 : f32 to vector<112x128xf32>
    %24 = arith.maximumf %22, %23 : vector<112x128xf32>
    %25 = arith.truncf %24 : vector<112x128xf32> to vector<112x128xbf16>
    %c0_18 = arith.constant 0 : index
    %c0_19 = arith.constant 0 : index
    %26 = vector.load %arg8[%c0_18, %c0_19] : memref<128x128xbf16, #tpu.memory_space<vmem>>, vector<128x128xbf16>
    %cst_20 = arith.constant dense<0.000000e+00> : vector<112x128xf32>
    %27 = tpu.matmul %25, %26, %cst_20 {dimension_numbers = #tpu.dot_dimension_numbers<[1], [0], [0], [1], [0, 0, 1, 1], [], []>} : vector<112x128xbf16>, vector<128x128xbf16>, vector<112x128xf32> -> vector<112x128xf32>
    %c0_21 = arith.constant 0 : index
    %c0_22 = arith.constant 0 : index
    %28 = vector.load %arg9[%c0_21, %c0_22] : memref<1x128xf32, #tpu.memory_space<vmem>>, vector<1x128xf32>
    %29 = vector.broadcast %28 : vector<1x128xf32> to vector<112x128xf32>
    %30 = arith.addf %27, %29 : vector<112x128xf32>
    %31 = vector.extract_strided_slice %30 {offsets = [0, 0], sizes = [112, 4], strides = [1, 1]} : vector<112x128xf32> to vector<112x4xf32>
    %32 = math.tanh %31 : vector<112x4xf32>
    %cst_23 = arith.constant 2.000000e+00 : f32
    %33 = vector.broadcast %cst_23 : f32 to vector<112x4xf32>
    %34 = arith.mulf %32, %33 : vector<112x4xf32>
    %c0_24 = arith.constant 0 : index
    %c0_25 = arith.constant 0 : index
    %35 = vector.load %arg10[%c0_24, %c0_25] : memref<112x4xf32, #tpu.memory_space<vmem>>, vector<112x4xf32>
    tpu.vector_store %arg10[%c0_24, %c0_25], %34 {strides = array<i32>} : memref<112x4xf32, #tpu.memory_space<vmem>>, vector<112x4xf32>,
    return
  }
  func.func @transform_0(%arg0: i32) -> (i32, i32) {
    %c0_i32 = arith.constant 0 : i32
    %c0_i32_0 = arith.constant 0 : i32
    return %arg0, %c0_i32 : i32, i32
  }
  func.func @transform_1(%arg0: i32) -> (i32, i32) {
    %c0_i32 = arith.constant 0 : i32
    %c0_i32_0 = arith.constant 0 : i32
    %c0_i32_1 = arith.constant 0 : i32
    return %c0_i32, %c0_i32_0 : i32, i32
  }
  func.func @transform_2(%arg0: i32) -> (i32, i32) {
    %c0_i32 = arith.constant 0 : i32
    %c0_i32_0 = arith.constant 0 : i32
    %c0_i32_1 = arith.constant 0 : i32
    return %c0_i32, %c0_i32_0 : i32, i32
  }
  func.func @transform_3(%arg0: i32) -> (i32, i32) {
    %c0_i32 = arith.constant 0 : i32
    %c0_i32_0 = arith.constant 0 : i32
    %c0_i32_1 = arith.constant 0 : i32
    return %c0_i32, %c0_i32_0 : i32, i32
  }
  func.func @transform_4(%arg0: i32) -> (i32, i32) {
    %c0_i32 = arith.constant 0 : i32
    %c0_i32_0 = arith.constant 0 : i32
    %c0_i32_1 = arith.constant 0 : i32
    return %c0_i32, %c0_i32_0 : i32, i32
  }
  func.func @transform_5(%arg0: i32) -> (i32, i32) {
    %c0_i32 = arith.constant 0 : i32
    %c0_i32_0 = arith.constant 0 : i32
    %c0_i32_1 = arith.constant 0 : i32
    return %c0_i32, %c0_i32_0 : i32, i32
  }
  func.func @transform_6(%arg0: i32) -> (i32, i32) {
    %c0_i32 = arith.constant 0 : i32
    %c0_i32_0 = arith.constant 0 : i32
    %c0_i32_1 = arith.constant 0 : i32
    return %c0_i32, %c0_i32_0 : i32, i32
  }
  func.func @transform_7(%arg0: i32) -> (i32, i32) {
    %c0_i32 = arith.constant 0 : i32
    %c0_i32_0 = arith.constant 0 : i32
    %c0_i32_1 = arith.constant 0 : i32
    return %c0_i32, %c0_i32_0 : i32, i32
  }
  func.func @transform_8(%arg0: i32) -> (i32, i32) {
    %c0_i32 = arith.constant 0 : i32
    %c0_i32_0 = arith.constant 0 : i32
    %c0_i32_1 = arith.constant 0 : i32
    return %c0_i32, %c0_i32_0 : i32, i32
  }
  func.func @transform_9(%arg0: i32) -> (i32, i32) {
    %c0_i32 = arith.constant 0 : i32
    %c0_i32_0 = arith.constant 0 : i32
    return %arg0, %c0_i32 : i32, i32
  }
}

</mosaic_0001>

<bundles_post_ra>
// kernel: actor_forward.1
= control target key start
LH: loop header
LB: loop body
LE: loop exit
PB: predicated region body
PF: predicated region fallthrough
CT: control target
= control target key end

     0   :  { %s1429_s30 = smov 0   ;;  %s1709_s0 = inlined_call_operand.vmem [shape: f32[224,32], index: 0, kind: input, shape index: {}]   ;;  %s1710_s1 = inlined_call_operand.vmem [shape: bf16[32,256], index: 1, kind: input, shape index: {}]   ;;  %s1711_s2 = inlined_call_operand.vmem [shape: f32[1,256], index: 2, kind: input, shape index: {}]   ;;  %s1712_s3 = inlined_call_operand.vmem [shape: bf16[256,128], index: 3, kind: input, shape index: {}]   ;;  %s1713_s4 = inlined_call_operand.vmem [shape: f32[1,128], index: 4, kind: input, shape index: {}]   ;;  %s1714_s5 = inlined_call_operand.vmem [shape: bf16[128,128], index: 5, kind: input, shape index: {}]   ;;  %s1715_s6 = inlined_call_operand.vmem [shape: f32[1,128], index: 6, kind: input, shape index: {}]   ;;  %s1716_s7 = inlined_call_operand.vmem [shape: bf16[128,128], index: 7, kind: input, shape index: {}]   ;;  %s1717_s8 = inlined_call_operand.vmem [shape: f32[1,128], index: 8, kind: input, shape index: {}]   ;;  %s1718_s9 = inlined_call_operand.vmem [shape: f32[224,4], index: 9, kind: output, shape index: {}]  }
   0x1 LB: > { %s1125_s10 = sadd.s32 4294967295, %s1377_s30   ;;  %p1129_p0 = scmp.ge.s32.totalorder %s1377_s30, 1  ;;  %s1377_s30 = sphi %s1429_s30, %s19_s30  }
   0x2   : > { %p288_p1 = scmp.lt.s32.totalorder %s1377_s30, 3 }
   0x4   : > { %p289_p2 = pnand %p1129_p0, %p288_p1 }
   0x5   : > { %s324_s27 = smul.u32 (!%p289_p2), 14, %s1125_s10 }
   0x6   : > { %292 = sbr.rel (%p289_p2) target bundleno = 691 (0x2b3), region = 56 }
   0x7   : > { %p325_p3 = scmp.lt.s32.totalorder (!%p289_p2), %s324_s27, 27 }
   0xb   : > { %v1142_v0 = vld [vmem:[%s1710_s1 + $0x10] sm:$0xf]  ;;  %v1295_v1 = vld [vmem:[%s1710_s1 + $0x14] sm:$0xf0]  ;;  %v1294_v2 = vld [vmem:[%s1710_s1 + $0x14] sm:$0xf] }
   0xc   : > { %v1143_v3 = vor.u32 %v1295_v1, %v1142_v0  ;;  %v1144_v4 = vld [vmem:[%s1710_s1 + $0x18] sm:$0xf0]  ;;  %v1134_v5 = vld [vmem:[%s1710_s1] sm:$0xf]  ;;  %v1293_v6 = vld [vmem:[%s1710_s1 + $0x4] sm:$0xf0] }
   0xd   : > { %v1147_v7 = vor.u32 %v1294_v2, %v1144_v4  ;;  %v1292_v8 = vld [vmem:[%s1710_s1 + $0x4] sm:$0xf]  ;;  %v1136_v9 = vld [vmem:[%s1710_s1 + $0x8] sm:$0xf0]  ;;  %v1135_v10 = vor.u32 %v1293_v6, %v1134_v5  ;;  %s1720_s27 = smov (!%p325_p3, %s324_s27), 27  ;;  %vm388_vm0 = vcmask 261120  }
   0xe   : > { %416 = vmatpush.bf16.msra.mxu0 %v1143_v3  ;;  %1328 = vmatpush.bf16.msra.mxu2 %v1143_v3  ;;  %v1139_v11 = vor.u32 %v1292_v8, %v1136_v9  ;;  %s1130_s28 = sshll.u32 %s1720_s27, 3  ;;  %v1303_v21 = vld [vmem:[%s1712_s3 + $0x38] sm:$0xff]  ;;  %v1302_v23 = vld [vmem:[%s1712_s3 + $0x30] sm:$0xff]  ;;  %v1301_v25 = vld [vmem:[%s1712_s3 + $0x28] sm:$0xff]  ;;  %vm1054_vm1 = vcmask 31744  }
   0xf   : > { %460 = vmatpush.bf16.msra.mxu1 %v1147_v7  ;;  %1330 = vmatpush.bf16.msra.mxu3 %v1147_v7  ;;  %s1469_s10 = scalar_lea.vmem %s1709_s0, %s1130_s28  ;;  %v1311_v22 = vld [vmem:[%s1712_s3 + $0x78] sm:$0xff]  ;;  %v1310_v24 = vld [vmem:[%s1712_s3 + $0x70] sm:$0xff]  ;;  %v1309_v26 = vld [vmem:[%s1712_s3 + $0x68] sm:$0xff]  ;;  %s1663_s15 = scalar_lea.vmem %s1718_s9, %s1130_s28 }
  0x10   : > { %v337_v12 = vld [vmem:[%s1469_s10] sm:$0xff]  ;;  %v338_v13 = vld [vmem:[%s1469_s10 + $0x8] sm:$0xff]  ;;  %v339_v15 = vld [vmem:[%s1469_s10 + $0x10] sm:$0xff] }
  0x11   : > { %v351_v14 = vpack.c.bf16 %v338_v13, %v337_v12  ;;  %v340_v16 = vld [vmem:[%s1469_s10 + $0x18] sm:$0xff]  ;;  %v345_v18 = vld [vmem:[%s1469_s10 + $0x40] sm:$0xff]  ;;  %v346_v19 = vld [vmem:[%s1469_s10 + $0x48] sm:$0xff] }
  0x12   : > { %417 = vmatpush.bf16.msra.mxu0 %v1135_v10  ;;  %1329 = vmatpush.bf16.msra.mxu2 %v1135_v10  ;;  %v352_v17 = vpack.c.bf16 %v340_v16, %v339_v15  ;;  %v355_v20 = vpack.c.bf16 %v346_v19, %v345_v18  ;;  %v341_v27 = vld [vmem:[%s1469_s10 + $0x20] sm:$0xff]  ;;  %v342_v28 = vld [vmem:[%s1469_s10 + $0x28] sm:$0xff]  ;;  %v347_v29 = vld [vmem:[%s1469_s10 + $0x50] sm:$0xff] }
  0x13   : > { %461 = vmatpush.bf16.msra.mxu1 %v1139_v11  ;;  %1331 = vmatpush.bf16.msra.mxu3 %v1139_v11  ;;  %v348_v30 = vld [vmem:[%s1469_s10 + $0x58] sm:$0xff]  ;;  %v353_v31 = vpack.c.bf16 %v342_v28, %v341_v27  ;;  %v1300_v32 = vld [vmem:[%s1712_s3 + $0x20] sm:$0xff]  ;;  %v1298_v37 = vld [vmem:[%s1712_s3 + $0x10] sm:$0xff] }
  0x14   : > { %v1308_v33 = vld [vmem:[%s1712_s3 + $0x60] sm:$0xff]  ;;  %v356_v34 = vpack.c.bf16 %v348_v30, %v347_v29  ;;  %v1299_v35 = vld [vmem:[%s1712_s3 + $0x18] sm:$0xff]  ;;  %v1306_v38 = vld [vmem:[%s1712_s3 + $0x50] sm:$0xff] }
  0x15   : > { %1148 = vmatmul.msk.bf16.vlgmr.msra.gmra.mxu0 %vm388_vm0, %v351_v14  ;;  %1152 = vmatmul.msk.bf16.vlgmr.msra.gmra.mxu2 %vm388_vm0, %v355_v20  ;;  %v1307_v36 = vld [vmem:[%s1712_s3 + $0x58] sm:$0xff]  ;;  %v343_v39 = vld [vmem:[%s1469_s10 + $0x30] sm:$0xff]  ;;  %v349_v41 = vld [vmem:[%s1469_s10 + $0x60] sm:$0xff] }
  0x16   : > { %1155 = vmatmul.msk.bf16.vlgmr.msra.gmra.mxu1 %vm388_vm0, %v351_v14  ;;  %1159 = vmatmul.msk.bf16.vlgmr.msra.gmra.mxu3 %vm388_vm0, %v355_v20  ;;  %v344_v40 = vld [vmem:[%s1469_s10 + $0x38] sm:$0xff]  ;;  %v350_v42 = vld [vmem:[%s1469_s10 + $0x68] sm:$0xff]  ;;  %v1296_v47 = vld [vmem:[%s1712_s3] sm:$0xff] }
  0x17   : > { %672 = vmatpush.bf16.msrb.mxu2 %v1303_v21  ;;  %716 = vmatpush.bf16.msrb.mxu3 %v1311_v22  ;;  %v354_v43 = vpack.c.bf16 %v344_v40, %v343_v39  ;;  %v357_v44 = vpack.c.bf16 %v350_v42, %v349_v41  ;;  %v1297_v45 = vld [vmem:[%s1712_s3 + $0x8] sm:$0xff]  ;;  %v1304_v48 = vld [vmem:[%s1712_s3 + $0x40] sm:$0xff] }
  0x18   : > { %v1305_v46 = vld [vmem:[%s1712_s3 + $0x48] sm:$0xff]  ;;  %v362_v49 = vld [vmem:[%s1711_s2] sm:$0x3] }
  0x19   : > { %v1550_v52 = vperm.slane %v362_v49, 0  ;;  %v1552_v53 = vperm.slane %v362_v49, 1  ;;  %v1318_v49 = vld [vmem:[%s1714_s5 + $0x30] sm:$0xff] }
  0x1b   : > { %673 = vmatpush.bf16.msrb.mxu2 %v1302_v23  ;;  %717 = vmatpush.bf16.msrb.mxu3 %v1310_v24 }
  0x1f   : > { %674 = vmatpush.bf16.msrb.mxu2 %v1301_v25  ;;  %718 = vmatpush.bf16.msrb.mxu3 %v1309_v26 }
  0x23   : > { %675 = vmatpush.bf16.msrb.mxu2 %v1300_v32  ;;  %719 = vmatpush.bf16.msrb.mxu3 %v1308_v33 }
  0x25   : > { %1149 = vmatmul.msk.bf16.gmra.mxu0 %vm388_vm0, %v352_v17  ;;  %1153 = vmatmul.msk.bf16.gmra.mxu2 %vm388_vm0, %v356_v34 }
  0x26   : > { %1156 = vmatmul.msk.bf16.gmra.mxu1 %vm388_vm0, %v352_v17  ;;  %1160 = vmatmul.msk.bf16.gmra.mxu3 %vm388_vm0, %v356_v34 }
  0x27   : > { %676 = vmatpush.bf16.msrb.mxu2 %v1299_v35  ;;  %720 = vmatpush.bf16.msrb.mxu3 %v1307_v36 }
  0x2b   : > { %677 = vmatpush.bf16.msrb.mxu2 %v1298_v37  ;;  %721 = vmatpush.bf16.msrb.mxu3 %v1306_v38 }
  0x2f   : > { %678 = vmatpush.bf16.msrb.mxu2 %v1297_v45  ;;  %722 = vmatpush.bf16.msrb.mxu3 %v1305_v46 }
  0x33   : > { %679 = vmatpush.bf16.msrb.mxu2 %v1296_v47  ;;  %723 = vmatpush.bf16.msrb.mxu3 %v1304_v48  ;;  %v1319_v48 = vld [vmem:[%s1714_s5 + $0x38] sm:$0xff] }
  0x34   : > { %849 = vmatpush.bf16.msrb.mxu0 %v1319_v48 }
  0x35   : > { %1150 = vmatmul.msk.bf16.gmra.mxu0 %vm388_vm0, %v353_v31  ;;  %1154 = vmatmul.msk.bf16.gmra.mxu2 %vm388_vm0, %v357_v44 }
  0x36   : > { %1157 = vmatmul.msk.bf16.gmra.mxu1 %vm388_vm0, %v353_v31  ;;  %1161 = vmatmul.msk.bf16.gmra.mxu3 %vm388_vm0, %v357_v44 }
  0x38   : > { %850 = vmatpush.bf16.msrb.mxu0 %v1318_v49 }
  0x45   : > { %1151 = vmatmul.msk.bf16.gmra.mxu0 %vm388_vm0, %v354_v43 }
  0x46   : > { %1158 = vmatmul.msk.bf16.gmra.mxu1 %vm388_vm0, %v354_v43 }
  0x92   : > { %v419_v50 = vpop.f32.mrf.mxu0 }
  0x93   : > { %v463_v51 = vpop.f32.mrf.mxu1  ;;  %v420_v54 = vadd.f32 %v419_v50, %v1550_v52 }
  0x94   : > { %v464_v55 = vadd.f32 %v463_v51, %v1552_v53 }
  0x95   : > { %v498_v60 = vmax.f32 %v420_v54, 0.0 }
  0x96   : > { %v499_v61 = vmax.f32 %v464_v55, 0.0 }
  0x98   : > { %v439_v30 = vpop.f32.mrf.mxu2 }
  0x99   : > { %v483_v31 = vpop.f32.mrf.mxu3  ;;  %v440_v54 = vadd.f32 %v439_v30, %v1550_v52  ;;  %v1313_v30 = vld [vmem:[%s1714_s5 + $0x8] sm:$0xff] }
  0x9a   : > { %v421_v56 = vpop.f32.mrf.mxu0  ;;  %v484_v55 = vadd.f32 %v483_v31, %v1552_v53  ;;  %v1312_v31 = vld [vmem:[%s1714_s5] sm:$0xff] }
  0x9b   : > { %v465_v57 = vpop.f32.mrf.mxu1  ;;  %v422_v58 = vadd.f32 %v421_v56, %v1550_v52 }
  0x9c   : > { %v466_v59 = vadd.f32 %v465_v57, %v1552_v53 }
  0x9d   : > { %v500_v62 = vmax.f32 %v422_v58, 0.0  ;;  %v514_v58 = vmax.f32 %v440_v54, 0.0 }
  0x9e   : > { %v501_v63 = vmax.f32 %v466_v59, 0.0  ;;  %v515_v59 = vmax.f32 %v484_v55, 0.0 }
  0x9f   : > { %v526_v0 = vpack.c.bf16 %v500_v62, %v498_v60 }
  0xa0   : > { %v527_v1 = vpack.c.bf16 %v501_v63, %v499_v61  ;;  %v441_v40 = vpop.f32.mrf.mxu2 }
  0xa1   : > { %680 = vmatmul.bf16.vlgmr.msrb.gmra.mxu2 %v526_v0  ;;  %v485_v41 = vpop.f32.mrf.mxu3  ;;  %v442_v56 = vadd.f32 %v441_v40, %v1550_v52 }
  0xa2   : > { %724 = vmatmul.bf16.vlgmr.msrb.gmra.mxu3 %v527_v1  ;;  %v424_v2 = vpop.f32.mrf.mxu0  ;;  %v486_v57 = vadd.f32 %v485_v41, %v1552_v53 }
  0xa3   : > { %v468_v3 = vpop.f32.mrf.mxu1  ;;  %v425_v4 = vadd.f32 %v424_v2, %v1550_v52  ;;  %v516_v60 = vmax.f32 %v442_v56, 0.0  ;;  %v1317_v2 = vld [vmem:[%s1714_s5 + $0x28] sm:$0xff] }
  0xa4   : > { %v469_v5 = vadd.f32 %v468_v3, %v1552_v53  ;;  %v517_v61 = vmax.f32 %v486_v57, 0.0  ;;  %851 = vmatpush.bf16.msrb.mxu0 %v1317_v2  ;;  %v1316_v3 = vld [vmem:[%s1714_s5 + $0x20] sm:$0xff] }
  0xa5   : > { %v502_v10 = vmax.f32 %v425_v4, 0.0  ;;  %v534_v62 = vpack.c.bf16 %v516_v60, %v514_v58 }
  0xa6   : > { %v503_v11 = vmax.f32 %v469_v5, 0.0  ;;  %v535_v63 = vpack.c.bf16 %v517_v61, %v515_v59 }
  0xa8   : > { %v444_v50 = vpop.f32.mrf.mxu2  ;;  %852 = vmatpush.bf16.msrb.mxu0 %v1316_v3 }
  0xa9   : > { %v488_v51 = vpop.f32.mrf.mxu3  ;;  %v445_v4 = vadd.f32 %v444_v50, %v1550_v52 }
  0xaa   : > { %v426_v6 = vpop.f32.mrf.mxu0  ;;  %v489_v5 = vadd.f32 %v488_v51, %v1552_v53 }
  0xab   : > { %v470_v7 = vpop.f32.mrf.mxu1  ;;  %v427_v8 = vadd.f32 %v426_v6, %v1550_v52 }
  0xac   : > { %v471_v9 = vadd.f32 %v470_v7, %v1552_v53 }
  0xad   : > { %v504_v12 = vmax.f32 %v427_v8, 0.0  ;;  %v1315_v8 = vld [vmem:[%s1714_s5 + $0x18] sm:$0xff] }
  0xae   : > { %v505_v13 = vmax.f32 %v471_v9, 0.0  ;;  %853 = vmatpush.bf16.msrb.mxu0 %v1315_v8 }
  0xaf   : > { %v528_v14 = vpack.c.bf16 %v504_v12, %v502_v10  ;;  %v519_v12 = vmax.f32 %v489_v5, 0.0 }
  0xb0   : > { %v529_v15 = vpack.c.bf16 %v505_v13, %v503_v11  ;;  %v446_v0 = vpop.f32.mrf.mxu2  ;;  %v518_v11 = vmax.f32 %v445_v4, 0.0 }
  0xb1   : > { %685 = vmatmul.bf16.gmra.mxu2 %v528_v14  ;;  %v490_v1 = vpop.f32.mrf.mxu3  ;;  %v447_v6 = vadd.f32 %v446_v0, %v1550_v52 }
  0xb2   : > { %729 = vmatmul.bf16.gmra.mxu3 %v529_v15  ;;  %v429_v16 = vpop.f32.mrf.mxu0  ;;  %v491_v7 = vadd.f32 %v490_v1, %v1552_v53  ;;  %v1314_v15 = vld [vmem:[%s1714_s5 + $0x10] sm:$0xff] }
  0xb3   : > { %v473_v17 = vpop.f32.mrf.mxu1  ;;  %v430_v18 = vadd.f32 %v429_v16, %v1550_v52  ;;  %v520_v13 = vmax.f32 %v447_v6, 0.0  ;;  %854 = vmatpush.bf16.msrb.mxu0 %v1314_v15 }
  0xb4   : > { %v474_v19 = vadd.f32 %v473_v17, %v1552_v53  ;;  %v521_v14 = vmax.f32 %v491_v7, 0.0 }
  0xb5   : > { %v506_v24 = vmax.f32 %v430_v18, 0.0  ;;  %v536_v16 = vpack.c.bf16 %v520_v13, %v518_v11 }
  0xb6   : > { %v507_v25 = vmax.f32 %v474_v19, 0.0  ;;  %v537_v17 = vpack.c.bf16 %v521_v14, %v519_v12  ;;  %v1327_v12 = vld [vmem:[%s1716_s7 + $0x38] sm:$0xff] }
  0xb7   : > { %855 = vmatpush.bf16.msrb.mxu0 %v1313_v30  ;;  %982 = vmatpush.bf16.msrb.mxu1 %v1327_v12  ;;  %v1323_v30 = vld [vmem:[%s1716_s7 + $0x18] sm:$0xff] }
  0xb8   : > { %v449_v9 = vpop.f32.mrf.mxu2 }
  0xb9   : > { %v493_v10 = vpop.f32.mrf.mxu3 }
  0xba   : > { %v431_v20 = vpop.f32.mrf.mxu0 }
  0xbb   : > { %v475_v21 = vpop.f32.mrf.mxu1  ;;  %v432_v22 = vadd.f32 %v431_v20, %v1550_v52  ;;  %v450_v20 = vadd.f32 %v449_v9, %v1550_v52  ;;  %856 = vmatpush.bf16.msrb.mxu0 %v1312_v31 }
  0xbc   : > { %v476_v23 = vadd.f32 %v475_v21, %v1552_v53  ;;  %v494_v21 = vadd.f32 %v493_v10, %v1552_v53 }
  0xbd   : > { %v508_v26 = vmax.f32 %v432_v22, 0.0 }
  0xbe   : > { %v509_v27 = vmax.f32 %v476_v23, 0.0 }
  0xbf   : > { %v530_v28 = vpack.c.bf16 %v508_v26, %v506_v24  ;;  %v522_v24 = vmax.f32 %v450_v20, 0.0 }
  0xc0   : > { %v531_v29 = vpack.c.bf16 %v509_v27, %v507_v25  ;;  %v451_v18 = vpop.f32.mrf.mxu2  ;;  %v523_v25 = vmax.f32 %v494_v21, 0.0 }
  0xc1   : > { %690 = vmatmul.bf16.gmra.mxu2 %v530_v28  ;;  %v495_v19 = vpop.f32.mrf.mxu3  ;;  %v452_v22 = vadd.f32 %v451_v18, %v1550_v52 }
  0xc2   : > { %734 = vmatmul.bf16.gmra.mxu3 %v531_v29  ;;  %v434_v32 = vpop.f32.mrf.mxu0  ;;  %v496_v23 = vadd.f32 %v495_v19, %v1552_v53 }
  0xc3   : > { %v478_v33 = vpop.f32.mrf.mxu1  ;;  %v435_v34 = vadd.f32 %v434_v32, %v1550_v52  ;;  %v524_v26 = vmax.f32 %v452_v22, 0.0  ;;  %v1609_v32 = vld [vmem:[%s1713_s4] ss:$0 sm:$0xff] }
  0xc4   : > { %v479_v35 = vadd.f32 %v478_v33, %v1552_v53  ;;  %v525_v27 = vmax.f32 %v496_v23, 0.0 }
  0xc5   : > { %v510_v42 = vmax.f32 %v435_v34, 0.0  ;;  %v538_v28 = vpack.c.bf16 %v524_v26, %v522_v24 }
  0xc6   : > { %v511_v43 = vmax.f32 %v479_v35, 0.0  ;;  %v539_v29 = vpack.c.bf16 %v525_v27, %v523_v25  ;;  %v1325_v25 = vld [vmem:[%s1716_s7 + $0x28] sm:$0xff] }
  0xca   : > { %v436_v36 = vpop.f32.mrf.mxu0 }
  0xcb   : > { %v480_v37 = vpop.f32.mrf.mxu1  ;;  %v437_v38 = vadd.f32 %v436_v36, %v1550_v52 }
  0xcc   : > { %v481_v39 = vadd.f32 %v480_v37, %v1552_v53 }
  0xcd   : > { %v512_v44 = vmax.f32 %v437_v38, 0.0 }
  0xce   : > { %v513_v45 = vmax.f32 %v481_v39, 0.0 }
  0xcf   : > { %v532_v46 = vpack.c.bf16 %v512_v44, %v510_v42 }
  0xd0   : > { %v533_v47 = vpack.c.bf16 %v513_v45, %v511_v43 }
  0xd1   : > { %695 = vmatmul.bf16.gmra.mxu2 %v532_v46 }
  0xd2   : > { %739 = vmatmul.bf16.gmra.mxu3 %v533_v47 }
  0xe1   : > { %700 = vmatmul.bf16.gmra.mxu2 %v534_v62 }
  0xe2   : > { %744 = vmatmul.bf16.gmra.mxu3 %v535_v63 }
  0xf1   : > { %705 = vmatmul.bf16.gmra.mxu2 %v536_v16 }
  0xf2   : > { %749 = vmatmul.bf16.gmra.mxu3 %v537_v17  ;;  %v1326_v17 = vld [vmem:[%s1716_s7 + $0x30] sm:$0xff] }
  0xf3   : > { %983 = vmatpush.bf16.msrb.mxu1 %v1326_v17 }
  0xf7   : > { %984 = vmatpush.bf16.msrb.mxu1 %v1325_v25 }
 0x101   : > { %710 = vmatmul.bf16.gmra.mxu2 %v538_v28 }
 0x102   : > { %754 = vmatmul.bf16.gmra.mxu3 %v539_v29  ;;  %v1324_v29 = vld [vmem:[%s1716_s7 + $0x20] sm:$0xff] }
 0x103   : > { %985 = vmatpush.bf16.msrb.mxu1 %v1324_v29 }
 0x107   : > { %986 = vmatpush.bf16.msrb.mxu1 %v1323_v30 }
 0x124   : > { %v681_v52 = vpop.f32.mrf.mxu2 }
 0x125   : > { %v725_v53 = vpop.f32.mrf.mxu3  ;;  %v682_v33 = vadd.f32 %v1609_v32, %v681_v52  ;;  %v1322_v52 = vld [vmem:[%s1716_s7 + $0x10] sm:$0xff] }
 0x126   : > { %987 = vmatpush.bf16.msrb.mxu1 %v1322_v52 }
 0x127   : > { %v726_v36 = vadd.f32 %v725_v53, %v682_v33 }
 0x129   : > { %v760_v39 = vmax.f32 %v726_v36, 0.0 }
 0x12c   : > { %v683_v34 = vpop.f32.mrf.mxu2 }
 0x12d   : > { %v727_v35 = vpop.f32.mrf.mxu3  ;;  %v684_v37 = vadd.f32 %v1609_v32, %v683_v34 }
 0x12f   : > { %v728_v38 = vadd.f32 %v727_v35, %v684_v37  ;;  %v1321_v37 = vld [vmem:[%s1716_s7 + $0x8] sm:$0xff] }
 0x130   : > { %988 = vmatpush.bf16.msrb.mxu1 %v1321_v37 }
 0x131   : > { %v761_v40 = vmax.f32 %v728_v38, 0.0 }
 0x133   : > { %v774_v41 = vpack.c.bf16 %v761_v40, %v760_v39 }
 0x134   : > { %v686_v42 = vpop.f32.mrf.mxu2 }
 0x135   : > { %v730_v43 = vpop.f32.mrf.mxu3  ;;  %857 = vmatmul.bf16.vlgmr.msrb.gmra.mxu0 %v774_v41  ;;  %v687_v44 = vadd.f32 %v1609_v32, %v686_v42 }
 0x137   : > { %v731_v47 = vadd.f32 %v730_v43, %v687_v44 }
 0x139   : > { %v762_v50 = vmax.f32 %v731_v47, 0.0 }
 0x13c   : > { %v688_v45 = vpop.f32.mrf.mxu2 }
 0x13d   : > { %v732_v46 = vpop.f32.mrf.mxu3  ;;  %v689_v48 = vadd.f32 %v1609_v32, %v688_v45 }
 0x13f   : > { %v733_v49 = vadd.f32 %v732_v46, %v689_v48 }
 0x141   : > { %v763_v51 = vmax.f32 %v733_v49, 0.0 }
 0x143   : > { %v775_v54 = vpack.c.bf16 %v763_v51, %v762_v50 }
 0x144   : > { %v691_v55 = vpop.f32.mrf.mxu2 }
 0x145   : > { %v735_v56 = vpop.f32.mrf.mxu3  ;;  %862 = vmatmul.bf16.gmra.mxu0 %v775_v54  ;;  %v692_v57 = vadd.f32 %v1609_v32, %v691_v55  ;;  %v1320_v54 = vld [vmem:[%s1716_s7] sm:$0xff] }
 0x146   : > { %989 = vmatpush.bf16.msrb.mxu1 %v1320_v54 }
 0x147   : > { %v736_v60 = vadd.f32 %v735_v56, %v692_v57  ;;  %v1341_v56 = vld [vmem:[%s1715_s6] ss:$0 sm:$0xff] }
 0x149   : > { %v764_v63 = vmax.f32 %v736_v60, 0.0 }
 0x14c   : > { %v693_v58 = vpop.f32.mrf.mxu2 }
 0x14d   : > { %v737_v59 = vpop.f32.mrf.mxu3  ;;  %v694_v61 = vadd.f32 %v1609_v32, %v693_v58 }
 0x14f   : > { %v738_v62 = vadd.f32 %v737_v59, %v694_v61 }
 0x151   : > { %v765_v0 = vmax.f32 %v738_v62, 0.0 }
 0x153   : > { %v776_v1 = vpack.c.bf16 %v765_v0, %v764_v63 }
 0x154   : > { %v696_v2 = vpop.f32.mrf.mxu2 }
 0x155   : > { %v740_v3 = vpop.f32.mrf.mxu3  ;;  %867 = vmatmul.bf16.gmra.mxu0 %v776_v1  ;;  %v697_v4 = vadd.f32 %v1609_v32, %v696_v2 }
 0x157   : > { %v741_v7 = vadd.f32 %v740_v3, %v697_v4 }
 0x159   : > { %v766_v10 = vmax.f32 %v741_v7, 0.0 }
 0x15c   : > { %v698_v5 = vpop.f32.mrf.mxu2 }
 0x15d   : > { %v742_v6 = vpop.f32.mrf.mxu3  ;;  %v699_v8 = vadd.f32 %v1609_v32, %v698_v5 }
 0x15f   : > { %v743_v9 = vadd.f32 %v742_v6, %v699_v8 }
 0x161   : > { %v767_v11 = vmax.f32 %v743_v9, 0.0 }
 0x163   : > { %v777_v13 = vpack.c.bf16 %v767_v11, %v766_v10 }
 0x164   : > { %v701_v14 = vpop.f32.mrf.mxu2 }
 0x165   : > { %v745_v15 = vpop.f32.mrf.mxu3  ;;  %872 = vmatmul.bf16.gmra.mxu0 %v777_v13  ;;  %v702_v16 = vadd.f32 %v1609_v32, %v701_v14 }
 0x167   : > { %v746_v20 = vadd.f32 %v745_v15, %v702_v16 }
 0x169   : > { %v768_v23 = vmax.f32 %v746_v20, 0.0 }
 0x16c   : > { %v703_v18 = vpop.f32.mrf.mxu2 }
 0x16d   : > { %v747_v19 = vpop.f32.mrf.mxu3  ;;  %v704_v21 = vadd.f32 %v1609_v32, %v703_v18 }
 0x16f   : > { %v748_v22 = vadd.f32 %v747_v19, %v704_v21 }
 0x171   : > { %v769_v24 = vmax.f32 %v748_v22, 0.0 }
 0x173   : > { %v778_v26 = vpack.c.bf16 %v769_v24, %v768_v23 }
 0x174   : > { %v706_v27 = vpop.f32.mrf.mxu2 }
 0x175   : > { %v750_v28 = vpop.f32.mrf.mxu3  ;;  %877 = vmatmul.bf16.gmra.mxu0 %v778_v26  ;;  %v707_v31 = vadd.f32 %v1609_v32, %v706_v27 }
 0x177   : > { %v751_v34 = vadd.f32 %v750_v28, %v707_v31 }
 0x179   : > { %v770_v38 = vmax.f32 %v751_v34, 0.0 }
 0x17c   : > { %v708_v53 = vpop.f32.mrf.mxu2 }
 0x17d   : > { %v752_v33 = vpop.f32.mrf.mxu3  ;;  %v709_v35 = vadd.f32 %v1609_v32, %v708_v53 }
 0x17f   : > { %v753_v36 = vadd.f32 %v752_v33, %v709_v35 }
 0x181   : > { %v771_v39 = vmax.f32 %v753_v36, 0.0 }
 0x183   : > { %v779_v40 = vpack.c.bf16 %v771_v39, %v770_v38  ;;  %v1655_v39 = vld [vmem:[%s1717_s8] ss:$0 sm:$0xff] }
 0x184   : > { %v711_v41 = vpop.f32.mrf.mxu2 }
 0x185   : > { %v755_v42 = vpop.f32.mrf.mxu3  ;;  %882 = vmatmul.bf16.gmra.mxu0 %v779_v40  ;;  %v712_v43 = vadd.f32 %v1609_v32, %v711_v41 }
 0x187   : > { %v756_v45 = vadd.f32 %v755_v42, %v712_v43 }
 0x189   : > { %v772_v49 = vmax.f32 %v756_v45, 0.0 }
 0x18c   : > { %v713_v44 = vpop.f32.mrf.mxu2 }
 0x18d   : > { %v714_v46 = vadd.f32 %v1609_v32, %v713_v44  ;;  %v757_v47 = vpop.f32.mrf.mxu3 }
 0x18f   : > { %v758_v48 = vadd.f32 %v757_v47, %v714_v46 }
 0x191   : > { %v773_v50 = vmax.f32 %v758_v48, 0.0 }
 0x193   : > { %v780_v51 = vpack.c.bf16 %v773_v50, %v772_v49 }
 0x195   : > { %887 = vmatmul.bf16.gmra.mxu0 %v780_v51 }
 0x1b2   : > { %v858_v55 = vpop.f32.mrf.mxu0 }
 0x1b3   : > { %v859_v57 = vadd.f32 %v1341_v56, %v858_v55 }
 0x1b5   : > { %v893_v32 = vmax.f32 %v859_v57, 0.0 }
 0x1ba   : > { %v860_v58 = vpop.f32.mrf.mxu0 }
 0x1bb   : > { %v861_v59 = vadd.f32 %v1341_v56, %v860_v58 }
 0x1bd   : > { %v894_v60 = vmax.f32 %v861_v59, 0.0 }
 0x1bf   : > { %v907_v61 = vpack.c.bf16 %v894_v60, %v893_v32 }
 0x1c1   : > { %990 = vmatmul.bf16.vlgmr.msrb.gmra.mxu1 %v907_v61 }
 0x1c2   : > { %v863_v62 = vpop.f32.mrf.mxu0 }
 0x1c3   : > { %v864_v63 = vadd.f32 %v1341_v56, %v863_v62 }
 0x1c5   : > { %v895_v2 = vmax.f32 %v864_v63, 0.0 }
 0x1ca   : > { %v865_v0 = vpop.f32.mrf.mxu0 }
 0x1cb   : > { %v866_v1 = vadd.f32 %v1341_v56, %v865_v0 }
 0x1cd   : > { %v896_v3 = vmax.f32 %v866_v1, 0.0 }
 0x1cf   : > { %v908_v4 = vpack.c.bf16 %v896_v3, %v895_v2 }
 0x1d1   : > { %995 = vmatmul.bf16.gmra.mxu1 %v908_v4 }
 0x1d2   : > { %v868_v5 = vpop.f32.mrf.mxu0 }
 0x1d3   : > { %v869_v6 = vadd.f32 %v1341_v56, %v868_v5 }
 0x1d5   : > { %v897_v9 = vmax.f32 %v869_v6, 0.0 }
 0x1da   : > { %v870_v7 = vpop.f32.mrf.mxu0 }
 0x1db   : > { %v871_v8 = vadd.f32 %v1341_v56, %v870_v7 }
 0x1dd   : > { %v898_v10 = vmax.f32 %v871_v8, 0.0 }
 0x1df   : > { %v909_v11 = vpack.c.bf16 %v898_v10, %v897_v9 }
 0x1e1   : > { %1000 = vmatmul.bf16.gmra.mxu1 %v909_v11 }
 0x1e2   : > { %v873_v12 = vpop.f32.mrf.mxu0 }
 0x1e3   : > { %v874_v13 = vadd.f32 %v1341_v56, %v873_v12 }
 0x1e5   : > { %v899_v16 = vmax.f32 %v874_v13, 0.0 }
 0x1ea   : > { %v875_v14 = vpop.f32.mrf.mxu0 }
 0x1eb   : > { %v876_v15 = vadd.f32 %v1341_v56, %v875_v14 }
 0x1ed   : > { %v900_v17 = vmax.f32 %v876_v15, 0.0 }
 0x1ef   : > { %v910_v18 = vpack.c.bf16 %v900_v17, %v899_v16 }
 0x1f1   : > { %1005 = vmatmul.bf16.gmra.mxu1 %v910_v18 }
 0x1f2   : > { %v878_v19 = vpop.f32.mrf.mxu0 }
 0x1f3   : > { %v879_v20 = vadd.f32 %v1341_v56, %v878_v19 }
 0x1f5   : > { %v901_v23 = vmax.f32 %v879_v20, 0.0 }
 0x1fa   : > { %v880_v21 = vpop.f32.mrf.mxu0 }
 0x1fb   : > { %v881_v22 = vadd.f32 %v1341_v56, %v880_v21 }
 0x1fd   : > { %v902_v24 = vmax.f32 %v881_v22, 0.0 }
 0x1ff   : > { %v911_v25 = vpack.c.bf16 %v902_v24, %v901_v23 }
 0x201   : > { %1010 = vmatmul.bf16.gmra.mxu1 %v911_v25 }
 0x202   : > { %v883_v26 = vpop.f32.mrf.mxu0 }
 0x203   : > { %v884_v27 = vadd.f32 %v1341_v56, %v883_v26 }
 0x205   : > { %v903_v30 = vmax.f32 %v884_v27, 0.0 }
 0x20a   : > { %v885_v28 = vpop.f32.mrf.mxu0 }
 0x20b   : > { %v886_v29 = vadd.f32 %v1341_v56, %v885_v28 }
 0x20d   : > { %v904_v31 = vmax.f32 %v886_v29, 0.0 }
 0x20f   : > { %v912_v52 = vpack.c.bf16 %v904_v31, %v903_v30 }
 0x211   : > { %1015 = vmatmul.bf16.gmra.mxu1 %v912_v52 }
 0x212   : > { %v888_v53 = vpop.f32.mrf.mxu0 }
 0x213   : > { %v889_v33 = vadd.f32 %v1341_v56, %v888_v53 }
 0x215   : > { %v905_v36 = vmax.f32 %v889_v33, 0.0 }
 0x21a   : > { %v890_v34 = vpop.f32.mrf.mxu0 }
 0x21b   : > { %v891_v35 = vadd.f32 %v1341_v56, %v890_v34 }
 0x21d   : > { %v906_v37 = vmax.f32 %v891_v35, 0.0 }
 0x21f   : > { %v913_v38 = vpack.c.bf16 %v906_v37, %v905_v36 }
 0x221   : > { %1020 = vmatmul.bf16.gmra.mxu1 %v913_v38 }
 0x23e   : > { %v991_v40 = vpop.f32.mrf.mxu1 }
 0x23f   : > { %v992_v41 = vadd.f32 %v1655_v39, %v991_v40 }
 0x241   : > { %1343 = vtanh.f32 %v992_v41 }
 0x246   : > { %v993_v42 = vpop.f32.mrf.mxu1 }
 0x247   : > { %v1344_v43 = vpop.eup %1343  ;;  %v994_v44 = vadd.f32 %v1655_v39, %v993_v42 }
 0x248   : > { %v1040_v45 = vmul.f32 2.0, %v1344_v43 }
 0x249   : > { %1345 = vtanh.f32 %v994_v44 }
 0x24a   : > { %1055 = vst.msk [vmem:[%s1663_s15] sm:$0xff] %vm1054_vm1, %v1040_v45 }
 0x24e   : > { %v996_v46 = vpop.f32.mrf.mxu1 }
 0x24f   : > { %v1346_v47 = vpop.eup %1345  ;;  %v997_v48 = vadd.f32 %v1655_v39, %v996_v46 }
 0x250   : > { %v1041_v49 = vmul.f32 2.0, %v1346_v47 }
 0x251   : > { %1347 = vtanh.f32 %v997_v48 }
 0x252   : > { %1056 = vst.msk [vmem:[%s1663_s15 + $0x8] sm:$0xff] %vm1054_vm1, %v1041_v49 }
 0x256   : > { %v998_v50 = vpop.f32.mrf.mxu1 }
 0x257   : > { %v1348_v51 = vpop.eup %1347  ;;  %v999_v54 = vadd.f32 %v1655_v39, %v998_v50 }
 0x258   : > { %v1042_v55 = vmul.f32 2.0, %v1348_v51 }
 0x259   : > { %1349 = vtanh.f32 %v999_v54 }
 0x25a   : > { %1057 = vst.msk [vmem:[%s1663_s15 + $0x10] sm:$0xff] %vm1054_vm1, %v1042_v55 }
 0x25e   : > { %v1001_v56 = vpop.f32.mrf.mxu1 }
 0x25f   : > { %v1350_v57 = vpop.eup %1349  ;;  %v1002_v58 = vadd.f32 %v1655_v39, %v1001_v56 }
 0x260   : > { %v1043_v59 = vmul.f32 2.0, %v1350_v57 }
 0x261   : > { %1351 = vtanh.f32 %v1002_v58 }
 0x262   : > { %1058 = vst.msk [vmem:[%s1663_s15 + $0x18] sm:$0xff] %vm1054_vm1, %v1043_v59 }
 0x266   : > { %v1003_v32 = vpop.f32.mrf.mxu1 }
 0x267   : > { %v1352_v60 = vpop.eup %1351  ;;  %v1004_v61 = vadd.f32 %v1655_v39, %v1003_v32 }
 0x268   : > { %v1044_v62 = vmul.f32 2.0, %v1352_v60 }
 0x269   : > { %1353 = vtanh.f32 %v1004_v61 }
 0x26a   : > { %1059 = vst.msk [vmem:[%s1663_s15 + $0x20] sm:$0xff] %vm1054_vm1, %v1044_v62 }
 0x26e   : > { %v1006_v63 = vpop.f32.mrf.mxu1 }
 0x26f   : > { %v1354_v0 = vpop.eup %1353  ;;  %v1007_v1 = vadd.f32 %v1655_v39, %v1006_v63 }
 0x270   : > { %v1045_v2 = vmul.f32 2.0, %v1354_v0 }
 0x271   : > { %1355 = vtanh.f32 %v1007_v1 }
 0x272   : > { %1060 = vst.msk [vmem:[%s1663_s15 + $0x28] sm:$0xff] %vm1054_vm1, %v1045_v2 }
 0x276   : > { %v1008_v3 = vpop.f32.mrf.mxu1 }
 0x277   : > { %v1356_v4 = vpop.eup %1355  ;;  %v1009_v5 = vadd.f32 %v1655_v39, %v1008_v3 }
 0x278   : > { %v1046_v6 = vmul.f32 2.0, %v1356_v4 }
 0x279   : > { %1357 = vtanh.f32 %v1009_v5 }
 0x27a   : > { %1061 = vst.msk [vmem:[%s1663_s15 + $0x30] sm:$0xff] %vm1054_vm1, %v1046_v6 }
 0x27e   : > { %v1011_v7 = vpop.f32.mrf.mxu1 }
 0x27f   : > { %v1358_v8 = vpop.eup %1357  ;;  %v1012_v9 = vadd.f32 %v1655_v39, %v1011_v7 }
 0x280   : > { %v1047_v10 = vmul.f32 2.0, %v1358_v8 }
 0x281   : > { %1359 = vtanh.f32 %v1012_v9 }
 0x282   : > { %1062 = vst.msk [vmem:[%s1663_s15 + $0x38] sm:$0xff] %vm1054_vm1, %v1047_v10 }
 0x286   : > { %v1013_v11 = vpop.f32.mrf.mxu1 }
 0x287   : > { %v1360_v12 = vpop.eup %1359  ;;  %v1014_v13 = vadd.f32 %v1655_v39, %v1013_v11 }
 0x288   : > { %v1048_v14 = vmul.f32 2.0, %v1360_v12 }
 0x289   : > { %1361 = vtanh.f32 %v1014_v13 }
 0x28a   : > { %1063 = vst.msk [vmem:[%s1663_s15 + $0x40] sm:$0xff] %vm1054_vm1, %v1048_v14 }
 0x28e   : > { %v1016_v15 = vpop.f32.mrf.mxu1 }
 0x28f   : > { %v1362_v16 = vpop.eup %1361  ;;  %v1017_v17 = vadd.f32 %v1655_v39, %v1016_v15 }
 0x290   : > { %v1049_v18 = vmul.f32 2.0, %v1362_v16 }
 0x291   : > { %1363 = vtanh.f32 %v1017_v17 }
 0x292   : > { %1064 = vst.msk [vmem:[%s1663_s15 + $0x48] sm:$0xff] %vm1054_vm1, %v1049_v18 }
 0x296   : > { %v1018_v19 = vpop.f32.mrf.mxu1 }
 0x297   : > { %v1364_v20 = vpop.eup %1363  ;;  %v1019_v21 = vadd.f32 %v1655_v39, %v1018_v19 }
 0x298   : > { %v1050_v22 = vmul.f32 2.0, %v1364_v20 }
 0x299   : > { %1365 = vtanh.f32 %v1019_v21 }
 0x29a   : > { %1065 = vst.msk [vmem:[%s1663_s15 + $0x50] sm:$0xff] %vm1054_vm1, %v1050_v22 }
 0x29e   : > { %v1021_v23 = vpop.f32.mrf.mxu1 }
 0x29f   : > { %v1366_v24 = vpop.eup %1365  ;;  %v1022_v25 = vadd.f32 %v1655_v39, %v1021_v23 }
 0x2a0   : > { %v1051_v26 = vmul.f32 2.0, %v1366_v24 }
 0x2a1   : > { %1367 = vtanh.f32 %v1022_v25 }
 0x2a2   : > { %1066 = vst.msk [vmem:[%s1663_s15 + $0x58] sm:$0xff] %vm1054_vm1, %v1051_v26 }
 0x2a6   : > { %v1023_v27 = vpop.f32.mrf.mxu1 }
 0x2a7   : > { %v1368_v28 = vpop.eup %1367  ;;  %v1024_v29 = vadd.f32 %v1655_v39, %v1023_v27 }
 0x2a8   : > { %v1052_v30 = vmul.f32 2.0, %v1368_v28 }
 0x2a9   : > { %1369 = vtanh.f32 %v1024_v29 }
 0x2aa   : > { %1067 = vst.msk [vmem:[%s1663_s15 + $0x60] sm:$0xff] %vm1054_vm1, %v1052_v30 }
 0x2af   : > { %v1370_v31 = vpop.eup %1369 }
 0x2b0   : > { %v1053_v52 = vmul.f32 2.0, %v1370_v31 }
 0x2b2   : > { %1068 = vst.msk [vmem:[%s1663_s15 + $0x68] sm:$0xff] %vm1054_vm1, %v1053_v52 }
 0x2b3 PF: > { %s19_s30 = sadd.s32 1, %s1377_s30  }
 0x2b4   : > { %p16_p4 = scmp.ge.s32.totalorder %s19_s30, 4  }
 0x2b6   :  { %18 = sbr.rel (!%p16_p4) target bundleno = 1 (0x1), region = 86 }

</bundles_post_ra>
